<compile_context>
chip_gen: v7x
topology: tpu7x:2x2x1
jax: 0.10.0
libtpu: 0.0.40
codegen_flags: <defaults>
</compile_context>

<pallas_src>
import functools

import jax
import jax.numpy as jnp
import numpy as np
from jax.experimental import pallas as pl
from jax.experimental.pallas import tpu as pltpu


# ----------------------------- Pallas kernel ------------------------------- #

def _nll_kernel(n_weights, l2_ref, row_ref, coly_ref, rrow_ref, *rest):
    """rest = (w_ref_0..w_ref_{n-1}, out_ref, lhs_ref, m_ref, acc_s, acc_se)."""
    w_refs = rest[:n_weights]
    out_ref = rest[n_weights]
    lhs_ref = rest[n_weights + 1]
    m_ref = rest[n_weights + 2]
    acc_s = rest[n_weights + 3]
    acc_se = rest[n_weights + 4]

    j = pl.program_id(0)
    nj = pl.num_programs(0)

    @pl.when(j == 0)
    def _():
        # Hoisted out of the j loop: one lane max + one exp pass over all i.
        r_full = rrow_ref[0:1, :]                      # (1, NI) risk, pads = 0
        m = jnp.max(r_full, axis=1, keepdims=True)     # (1, 1); any finite m is exact
        m_ref[...] = m
        lhs_ref[0:1, :] = jnp.exp(r_full - m)          # exp(r - m)
        lhs_ref[1:2, :] = jnp.ones_like(r_full)        # ones row -> den via same matmul
        acc_s[...] = jnp.zeros_like(acc_s)
        acc_se[...] = jnp.zeros_like(acc_se)

    y_col = coly_ref[...]                              # (NI, 1) y[i], pads = -inf
    y_row = row_ref[0:1, :]                            # (1, TJ) y[j]
    r_row = row_ref[1:2, :]                            # (1, TJ) risk[j]
    e_row = row_ref[2:3, :]                            # (1, TJ) event[j], pads = 0

    # Risk set: keep[i, j] = (y[j] <= y[i]); ties stay in the set. Single compare
    # + one convert, shared by num and den; padded i rows (y = -inf) never enter.
    keep_f = (y_row <= y_col).astype(jnp.float32)      # (NI, TJ)

    # Both masked column reductions on the MXU (f32 multi-pass):
    #   [exp(r - m); 1] @ keep -> (2, TJ) = [num; den]
    nd = jnp.dot(lhs_ref[...], keep_f, preferred_element_type=jnp.float32)
    num = nd[0:1, :]                                   # (1, TJ)
    den = nd[1:2, :]                                   # (1, TJ)

    # log_loss = m + log(sum_i exp(r_i - m) mask / den)  (mathematically exact).
    log_loss = m_ref[...] + jnp.log(num / jnp.maximum(den, 1.0))     # (1, TJ)

    # Gate by e > 0: identical to (r - log_loss) * e for real columns, and makes
    # padded j lanes (e == 0, den possibly 0) contribute exactly nothing.
    contrib = jnp.where(e_row > 0.0, (r_row - log_loss) * e_row, 0.0)
    acc_s[...] += jnp.sum(contrib, axis=1, keepdims=True)            # (1, 1)
    acc_se[...] += jnp.sum(e_row, axis=1, keepdims=True)             # (1, 1)

    @pl.when(j == nj - 1)
    def _():
        nll = -acc_s[...] / (acc_se[...] + 1.0)                      # (1, 1)
        reg = jnp.zeros((1, 1), jnp.float32)
        for w_ref in w_refs:              # Regularization(order=2): Frobenius norm
            w = w_ref[...].astype(jnp.float32)
            ss = jnp.sum(w * w, axis=1, keepdims=True)
            ss = jnp.sum(ss, axis=0, keepdims=True)
            reg = reg + jnp.sqrt(ss)
        total = nll + l2_ref[0] * reg                                # (1, 1)
        out_ref[0] = total[0, 0]          # scalar store to SMEM output


# ------------------------------ Python wrapper ------------------------------ #

def _round_up(x, m):
    return (x + m - 1) // m * m


def _vmem_budget_bytes():
    """Generation-aware scoped-VMEM budget (v5e/v6e ~96 MiB, v7x ~48 MiB)."""
    try:
        cap = getattr(pltpu.get_tpu_info(), "vmem_capacity_bytes", None)
    except Exception:
        cap = None
    if not cap:
        return 32 * 1024 * 1024                 # conservative, works everywhere
    return max(32 * 1024 * 1024, min(int(cap) * 3 // 4, 96 * 1024 * 1024))


def negative_log_likelihood(risk_pred, y, e, model_weights, l2_reg):
    """Full NegativeLogLikelihood.forward in a single pallas_call.

    risk_pred, y, e: (N, 1) float arrays.  model_weights: list of 'weight' params.
    """
    n = risk_pred.shape[0]
    r = jnp.asarray(risk_pred, jnp.float32).reshape(n)
    yv = jnp.asarray(y, jnp.float32).reshape(n)
    ev = jnp.asarray(e, jnp.float32).reshape(n)

    vmem_budget = _vmem_budget_bytes()
    tj_max = 512 if vmem_budget >= 64 * 1024 * 1024 else 256   # multiples of 128

    # Lane axis (j) padded to a multiple of 128; tiled with TJ per grid step.
    nj = _round_up(n, 128)
    if nj <= tj_max:
        tj = nj
    else:
        tj = tj_max
        nj = _round_up(n, tj)
    grid_j = nj // tj

    # Sublane axis (i) padded to a multiple of 8; pads excluded via y = -inf.
    ni = _round_up(n, 8)

    # Packed inputs:
    #   row  (3, NJ): lane-dense [y; r; e], tiled over j (e pads = 0).
    #   coly (NI, 1): resident y column for the risk-set compare (pads = -inf).
    #   rrow (1, NI): resident lane-dense risk row, read once at j == 0.
    row = jnp.zeros((3, nj), jnp.float32)
    row = row.at[0, :n].set(yv).at[1, :n].set(r).at[2, :n].set(ev)
    coly = jnp.full((ni, 1), -jnp.inf, jnp.float32).at[:n, 0].set(yv)
    rrow = jnp.zeros((1, ni), jnp.float32).at[0, :n].set(r)
    l2 = jnp.full((1,), float(l2_reg), jnp.float32)

    ws = []
    for w in model_weights:
        w2 = jnp.asarray(w, jnp.float32)
        w2 = w2.reshape(1, -1) if w2.ndim == 1 else w2.reshape(w2.shape[0], -1)
        ws.append(w2)

    in_specs = [
        pl.BlockSpec(memory_space=pltpu.MemorySpace.SMEM),    # l2_reg scalar (no retrace)
        pl.BlockSpec((3, tj), lambda j: (0, j)),              # row slab: tiled over j
        pl.BlockSpec((ni, 1), lambda j: (0, 0)),              # y column: resident
        pl.BlockSpec((1, ni), lambda j: (0, 0)),              # risk row: resident
    ] + [pl.BlockSpec(w.shape, lambda j: (0, 0)) for w in ws]  # weights: resident

    kernel = functools.partial(_nll_kernel, len(ws))

    out = pl.pallas_call(
        kernel,
        out_shape=jax.ShapeDtypeStruct((1,), jnp.float32),
        grid_spec=pltpu.PrefetchScalarGridSpec(
            num_scalar_prefetch=0,
            grid=(grid_j,),
            in_specs=in_specs,
            out_specs=pl.BlockSpec(memory_space=pltpu.MemorySpace.SMEM),
            scratch_shapes=[
                pltpu.VMEM((2, ni), jnp.float32),     # [exp(r - m); 1] (hoisted)
                pltpu.VMEM((1, 1), jnp.float32),      # m (max of risk)
                pltpu.VMEM((1, 1), jnp.float32),      # acc_s
                pltpu.VMEM((1, 1), jnp.float32),      # acc_se
            ],
        ),
        compiler_params=pltpu.CompilerParams(
            dimension_semantics=("arbitrary",),       # j is a serial reduction axis
            vmem_limit_bytes=vmem_budget,
        ),
    )(l2, row, coly, rrow, *ws)
    return out[0]


# --------------------------------- reference -------------------------------- #

def _reference(risk_pred, y, e, weights, l2_reg):
    risk_pred = np.asarray(risk_pred, np.float32)
    y = np.asarray(y, np.float32)
    e = np.asarray(e, np.float32)
    mask = np.ones((y.shape[0], y.shape[0]), np.float32)
    mask[(y.T - y) > 0] = 0
    log_loss = np.exp(risk_pred) * mask
    log_loss = log_loss.sum(axis=0) / mask.sum(axis=0)
    log_loss = np.log(log_loss).reshape(-1, 1)
    nll = -np.sum((risk_pred - log_loss) * e) / (np.sum(e) + 1.0)
    reg = sum(np.linalg.norm(np.asarray(w, np.float32)) for w in weights)
    return nll + l2_reg * reg


# ----------------------------------- main ----------------------------------- #

if __name__ == "__main__":
    key = jax.random.PRNGKey(0)
    k_r, k_y, k_e, k_w1, k_w2 = jax.random.split(key, 5)

    N = 8          # survival batch size
    IN, HID = 16, 32

    risk_pred = jax.random.normal(k_r, (N, 1), jnp.float32)            # risk scores
    y = jax.random.uniform(k_y, (N, 1), jnp.float32, 0.1, 10.0)        # survival times
    e = (jax.random.uniform(k_e, (N, 1), jnp.float32) > 0.3).astype(jnp.float32)

    # Synthetic "DeepSurv"-style model 'weight' parameters (deterministic init).
    w1 = jax.random.normal(k_w1, (HID, IN), jnp.float32) * 0.1   # Linear(16,32).weight
    w2 = jax.random.normal(k_w2, (1, HID), jnp.float32) * 0.1    # Linear(32,1).weight
    model_weights = [w1, w2]
    L2_REG = 1e-3                                                # config (weight_decay)

    out = negative_log_likelihood(risk_pred, y, e, model_weights, L2_REG)
    out = jax.block_until_ready(out)

    ref = _reference(risk_pred, y, e, model_weights, L2_REG)
    assert np.allclose(np.asarray(out), ref, rtol=1e-5, atol=1e-5), (out, ref)

    print("KERNEL_OK")
</pallas_src>

<mosaic_0001>
module attributes {stable_mosaic.version = 11 : i64} {
  func.func @_nll_kernel(%arg0: i32, %arg1: memref<1xf32, #tpu.memory_space<smem>>, %arg2: memref<3x128xf32, #tpu.memory_space<vmem>>, %arg3: memref<8x1xf32, #tpu.memory_space<vmem>>, %arg4: memref<1x8xf32, #tpu.memory_space<vmem>>, %arg5: memref<32x16xf32, #tpu.memory_space<vmem>>, %arg6: memref<1x32xf32, #tpu.memory_space<vmem>>, %arg7: memref<1xf32, #tpu.memory_space<smem>>, %arg8: memref<2x8xf32, #tpu.memory_space<vmem>>, %arg9: memref<1x1xf32, #tpu.memory_space<vmem>>, %arg10: memref<1x1xf32, #tpu.memory_space<vmem>>, %arg11: memref<1x1xf32, #tpu.memory_space<vmem>>) attributes {dimension_semantics = [#tpu.dimension_semantics<arbitrary>], iteration_bounds = array<i64: 1>, scalar_prefetch = 0 : i64, scratch_operands = 4 : i64, tpu.core_type = #tpu.core_type<tc>, window_params = [{transform_indices = @transform_0, window_bounds = array<i64: 1>}, {transform_indices = @transform_1, window_bounds = array<i64: 3, 128>}, {pipeline_mode = #tpu.pipeline_mode<synchronous>, transform_indices = @transform_2, window_bounds = array<i64: 8, 1>}, {pipeline_mode = #tpu.pipeline_mode<synchronous>, transform_indices = @transform_3, window_bounds = array<i64: 1, 8>}, {pipeline_mode = #tpu.pipeline_mode<synchronous>, transform_indices = @transform_4, window_bounds = array<i64: 32, 16>}, {pipeline_mode = #tpu.pipeline_mode<synchronous>, transform_indices = @transform_5, window_bounds = array<i64: 1, 32>}, {transform_indices = @transform_6, window_bounds = array<i64: 1>}]} {
    %c0_i32 = arith.constant 0 : i32
    %0 = arith.cmpi eq, %arg0, %c0_i32 : i32
    %1 = arith.extui %0 : i1 to i32
    %c0_i32_0 = arith.constant 0 : i32
    %2 = arith.cmpi ne, %1, %c0_i32_0 : i32
    scf.if %2 {
      %c0_25 = arith.constant 0 : index
      %c0_26 = arith.constant 0 : index
      %42 = vector.load %arg4[%c0_25, %c0_26] : memref<1x8xf32, #tpu.memory_space<vmem>>, vector<1x8xf32>
      %cst_27 = arith.constant dense<0xFF800000> : vector<1xf32>
      %43 = vector.multi_reduction <maximumf>, %42, %cst_27 [1] : vector<1x8xf32> to vector<1xf32>
      %44 = vector.shape_cast %43 : vector<1xf32> to vector<1x1xf32>
      %c0_28 = arith.constant 0 : index
      %c0_29 = arith.constant 0 : index
      %45 = vector.load %arg9[%c0_28, %c0_29] : memref<1x1xf32, #tpu.memory_space<vmem>>, vector<1x1xf32>
      tpu.vector_store %arg9[%c0_28, %c0_29], %44 {strides = array<i32>} : memref<1x1xf32, #tpu.memory_space<vmem>>, vector<1x1xf32>,
      %46 = vector.broadcast %44 : vector<1x1xf32> to vector<1x8xf32>
      %47 = arith.subf %42, %46 : vector<1x8xf32>
      %48 = math.exp %47 : vector<1x8xf32>
      %c0_30 = arith.constant 0 : index
      %c0_31 = arith.constant 0 : index
      %49 = vector.load %arg8[%c0_30, %c0_31] : memref<2x8xf32, #tpu.memory_space<vmem>>, vector<1x8xf32>
      tpu.vector_store %arg8[%c0_30, %c0_31], %48 {strides = array<i32>} : memref<2x8xf32, #tpu.memory_space<vmem>>, vector<1x8xf32>,
      %cst_32 = arith.constant 1.000000e+00 : f32
      %50 = vector.broadcast %cst_32 : f32 to vector<1x8xf32>
      %c1_33 = arith.constant 1 : index
      %c0_34 = arith.constant 0 : index
      %51 = vector.load %arg8[%c1_33, %c0_34] : memref<2x8xf32, #tpu.memory_space<vmem>>, vector<1x8xf32>
      tpu.vector_store %arg8[%c1_33, %c0_34], %50 {strides = array<i32>} : memref<2x8xf32, #tpu.memory_space<vmem>>, vector<1x8xf32>,
      %cst_35 = arith.constant 0.000000e+00 : f32
      %52 = vector.broadcast %cst_35 : f32 to vector<1x1xf32>
      %c0_36 = arith.constant 0 : index
      %c0_37 = arith.constant 0 : index
      %53 = vector.load %arg10[%c0_36, %c0_37] : memref<1x1xf32, #tpu.memory_space<vmem>>, vector<1x1xf32>
      tpu.vector_store %arg10[%c0_36, %c0_37], %52 {strides = array<i32>} : memref<1x1xf32, #tpu.memory_space<vmem>>, vector<1x1xf32>,
      %cst_38 = arith.constant 0.000000e+00 : f32
      %54 = vector.broadcast %cst_38 : f32 to vector<1x1xf32>
      %c0_39 = arith.constant 0 : index
      %c0_40 = arith.constant 0 : index
      %55 = vector.load %arg11[%c0_39, %c0_40] : memref<1x1xf32, #tpu.memory_space<vmem>>, vector<1x1xf32>
      tpu.vector_store %arg11[%c0_39, %c0_40], %54 {strides = array<i32>} : memref<1x1xf32, #tpu.memory_space<vmem>>, vector<1x1xf32>,
    } else {
    }
    %c0 = arith.constant 0 : index
    %c0_1 = arith.constant 0 : index
    %3 = vector.load %arg3[%c0, %c0_1] : memref<8x1xf32, #tpu.memory_space<vmem>>, vector<8x1xf32>
    %c0_2 = arith.constant 0 : index
    %c0_3 = arith.constant 0 : index
    %4 = vector.load %arg2[%c0_2, %c0_3] : memref<3x128xf32, #tpu.memory_space<vmem>>, vector<1x128xf32>
    %c1 = arith.constant 1 : index
    %c0_4 = arith.constant 0 : index
    %5 = vector.load %arg2[%c1, %c0_4] : memref<3x128xf32, #tpu.memory_space<vmem>>, vector<1x128xf32>
    %c2 = arith.constant 2 : index
    %c0_5 = arith.constant 0 : index
    %6 = vector.load %arg2[%c2, %c0_5] : memref<3x128xf32, #tpu.memory_space<vmem>>, vector<1x128xf32>
    %7 = vector.broadcast %4 : vector<1x128xf32> to vector<8x128xf32>
    %8 = vector.broadcast %3 : vector<8x1xf32> to vector<8x128xf32>
    %9 = arith.cmpf ole, %7, %8 : vector<8x128xf32>
    %10 = arith.extui %9 : vector<8x128xi1> to vector<8x128xi32>
    %11 = arith.sitofp %10 : vector<8x128xi32> to vector<8x128xf32>
    %c0_6 = arith.constant 0 : index
    %c0_7 = arith.constant 0 : index
    %12 = vector.load %arg8[%c0_6, %c0_7] : memref<2x8xf32, #tpu.memory_space<vmem>>, vector<2x8xf32>
    %cst = arith.constant dense<0.000000e+00> : vector<2x128xf32>
    %13 = tpu.matmul %12, %11, %cst {dimension_numbers = #tpu.dot_dimension_numbers<[1], [0], [0], [1], [0, 0, 1, 1], [], []>} : vector<2x8xf32>, vector<8x128xf32>, vector<2x128xf32> -> vector<2x128xf32>
    %14 = vector.extract_strided_slice %13 {offsets = [0, 0], sizes = [1, 128], strides = [1, 1]} : vector<2x128xf32> to vector<1x128xf32>
    %15 = vector.extract_strided_slice %13 {offsets = [1, 0], sizes = [1, 128], strides = [1, 1]} : vector<2x128xf32> to vector<1x128xf32>
    %c0_8 = arith.constant 0 : index
    %c0_9 = arith.constant 0 : index
    %16 = vector.load %arg9[%c0_8, %c0_9] : memref<1x1xf32, #tpu.memory_space<vmem>>, vector<1x1xf32>
    %cst_10 = arith.constant 1.000000e+00 : f32
    %17 = vector.broadcast %cst_10 : f32 to vector<1x128xf32>
    %18 = arith.maximumf %15, %17 : vector<1x128xf32>
    %19 = arith.divf %14, %18 : vector<1x128xf32>
    %20 = math.log %19 : vector<1x128xf32>
    %21 = vector.broadcast %16 : vector<1x1xf32> to vector<1x128xf32>
    %22 = arith.addf %21, %20 : vector<1x128xf32>
    %cst_11 = arith.constant 0.000000e+00 : f32
    %23 = vector.broadcast %cst_11 : f32 to vector<1x128xf32>
    %24 = arith.cmpf ogt, %6, %23 : vector<1x128xf32>
    %25 = arith.subf %5, %22 : vector<1x128xf32>
    %26 = arith.mulf %25, %6 : vector<1x128xf32>
    %cst_12 = arith.constant 0.000000e+00 : f32
    %27 = vector.broadcast %cst_12 : f32 to vector<1x128xf32>
    %28 = arith.select %24, %26, %27 : vector<1x128xi1>, vector<1x128xf32>
    %c0_13 = arith.constant 0 : index
    %c0_14 = arith.constant 0 : index
    %29 = vector.load %arg10[%c0_13, %c0_14] : memref<1x1xf32, #tpu.memory_space<vmem>>, vector<1x1xf32>
    %cst_15 = arith.constant dense<0.000000e+00> : vector<1xf32>
    %30 = vector.multi_reduction <add>, %28, %cst_15 [1] : vector<1x128xf32> to vector<1xf32>
    %31 = vector.shape_cast %30 : vector<1xf32> to vector<1x1xf32>
    %32 = arith.addf %29, %31 : vector<1x1xf32>
    %c0_16 = arith.constant 0 : index
    %c0_17 = arith.constant 0 : index
    %33 = vector.load %arg10[%c0_16, %c0_17] : memref<1x1xf32, #tpu.memory_space<vmem>>, vector<1x1xf32>
    tpu.vector_store %arg10[%c0_16, %c0_17], %32 {strides = array<i32>} : memref<1x1xf32, #tpu.memory_space<vmem>>, vector<1x1xf32>,
    %c0_18 = arith.constant 0 : index
    %c0_19 = arith.constant 0 : index
    %34 = vector.load %arg11[%c0_18, %c0_19] : memref<1x1xf32, #tpu.memory_space<vmem>>, vector<1x1xf32>
    %cst_20 = arith.constant dense<0.000000e+00> : vector<1xf32>
    %35 = vector.multi_reduction <add>, %6, %cst_20 [1] : vector<1x128xf32> to vector<1xf32>
    %36 = vector.shape_cast %35 : vector<1xf32> to vector<1x1xf32>
    %37 = arith.addf %34, %36 : vector<1x1xf32>
    %c0_21 = arith.constant 0 : index
    %c0_22 = arith.constant 0 : index
    %38 = vector.load %arg11[%c0_21, %c0_22] : memref<1x1xf32, #tpu.memory_space<vmem>>, vector<1x1xf32>
    tpu.vector_store %arg11[%c0_21, %c0_22], %37 {strides = array<i32>} : memref<1x1xf32, #tpu.memory_space<vmem>>, vector<1x1xf32>,
    %c0_i32_23 = arith.constant 0 : i32
    %39 = arith.cmpi eq, %arg0, %c0_i32_23 : i32
    %40 = arith.extui %39 : i1 to i32
    %c0_i32_24 = arith.constant 0 : i32
    %41 = arith.cmpi ne, %40, %c0_i32_24 : i32
    scf.if %41 {
      %c0_25 = arith.constant 0 : index
      %c0_26 = arith.constant 0 : index
      %42 = vector.load %arg10[%c0_25, %c0_26] : memref<1x1xf32, #tpu.memory_space<vmem>>, vector<1x1xf32>
      %cst_27 = arith.constant 0.000000e+00 : f32
      %43 = vector.broadcast %cst_27 : f32 to vector<1x1xf32>
      %44 = arith.subf %43, %42 : vector<1x1xf32>
      %c0_28 = arith.constant 0 : index
      %c0_29 = arith.constant 0 : index
      %45 = vector.load %arg11[%c0_28, %c0_29] : memref<1x1xf32, #tpu.memory_space<vmem>>, vector<1x1xf32>
      %cst_30 = arith.constant 1.000000e+00 : f32
      %46 = vector.broadcast %cst_30 : f32 to vector<1x1xf32>
      %47 = arith.addf %45, %46 : vector<1x1xf32>
      %48 = arith.divf %44, %47 : vector<1x1xf32>
      %cst_31 = arith.constant 0.000000e+00 : f32
      %49 = vector.broadcast %cst_31 : f32 to vector<1x1xf32>
      %c0_32 = arith.constant 0 : index
      %c0_33 = arith.constant 0 : index
      %50 = vector.load %arg5[%c0_32, %c0_33] : memref<32x16xf32, #tpu.memory_space<vmem>>, vector<32x16xf32>
      %51 = arith.mulf %50, %50 : vector<32x16xf32>
      %cst_34 = arith.constant dense<0.000000e+00> : vector<32xf32>
      %52 = vector.multi_reduction <add>, %51, %cst_34 [1] : vector<32x16xf32> to vector<32xf32>
      %53 = vector.shape_cast %52 : vector<32xf32> to vector<32x1xf32>
      %cst_35 = arith.constant dense<0.000000e+00> : vector<1xf32>
      %54 = vector.multi_reduction <add>, %53, %cst_35 [0] : vector<32x1xf32> to vector<1xf32>
      %55 = vector.shape_cast %54 : vector<1xf32> to vector<1x1xf32>
      %56 = math.sqrt %55 : vector<1x1xf32>
      %57 = arith.addf %49, %56 : vector<1x1xf32>
      %c0_36 = arith.constant 0 : index
      %c0_37 = arith.constant 0 : index
      %58 = vector.load %arg6[%c0_36, %c0_37] : memref<1x32xf32, #tpu.memory_space<vmem>>, vector<1x32xf32>
      %59 = arith.mulf %58, %58 : vector<1x32xf32>
      %cst_38 = arith.constant dense<0.000000e+00> : vector<1xf32>
      %60 = vector.multi_reduction <add>, %59, %cst_38 [1] : vector<1x32xf32> to vector<1xf32>
      %61 = vector.shape_cast %60 : vector<1xf32> to vector<1x1xf32>
      %cst_39 = arith.constant dense<0.000000e+00> : vector<1xf32>
      %62 = vector.multi_reduction <add>, %61, %cst_39 [0] : vector<1x1xf32> to vector<1xf32>
      %63 = vector.shape_cast %62 : vector<1xf32> to vector<1x1xf32>
      %64 = math.sqrt %63 : vector<1x1xf32>
      %65 = arith.addf %57, %64 : vector<1x1xf32>
      %c0_40 = arith.constant 0 : index
      %66 = memref.load %arg1[%c0_40] : memref<1xf32, #tpu.memory_space<smem>>
      %67 = vector.broadcast %66 : f32 to vector<1x1xf32>
      %68 = arith.mulf %67, %65 : vector<1x1xf32>
      %69 = arith.addf %48, %68 : vector<1x1xf32>
      %70 = vector.extract %69[0, 0] : f32 from vector<1x1xf32>
      %c0_41 = arith.constant 0 : index
      %71 = memref.load %arg7[%c0_41] : memref<1xf32, #tpu.memory_space<smem>>
      memref.store %70, %arg7[%c0_41] : memref<1xf32, #tpu.memory_space<smem>>
    } else {
    }
    return
  }
  func.func @transform_0(%arg0: i32) -> i32 {
    %c0_i32 = arith.constant 0 : i32
    %c0_i32_0 = arith.constant 0 : i32
    return %c0_i32 : i32
  }
  func.func @transform_1(%arg0: i32) -> (i32, i32) {
    %c0_i32 = arith.constant 0 : i32
    %c0_i32_0 = arith.constant 0 : i32
    return %c0_i32, %arg0 : i32, i32
  }
  func.func @transform_2(%arg0: i32) -> (i32, i32) {
    %c0_i32 = arith.constant 0 : i32
    %c0_i32_0 = arith.constant 0 : i32
    %c0_i32_1 = arith.constant 0 : i32
    return %c0_i32, %c0_i32_0 : i32, i32
  }
  func.func @transform_3(%arg0: i32) -> (i32, i32) {
    %c0_i32 = arith.constant 0 : i32
    %c0_i32_0 = arith.constant 0 : i32
    %c0_i32_1 = arith.constant 0 : i32
    return %c0_i32, %c0_i32_0 : i32, i32
  }
  func.func @transform_4(%arg0: i32) -> (i32, i32) {
    %c0_i32 = arith.constant 0 : i32
    %c0_i32_0 = arith.constant 0 : i32
    %c0_i32_1 = arith.constant 0 : i32
    return %c0_i32, %c0_i32_0 : i32, i32
  }
  func.func @transform_5(%arg0: i32) -> (i32, i32) {
    %c0_i32 = arith.constant 0 : i32
    %c0_i32_0 = arith.constant 0 : i32
    %c0_i32_1 = arith.constant 0 : i32
    return %c0_i32, %c0_i32_0 : i32, i32
  }
  func.func @transform_6(%arg0: i32) -> i32 {
    %c0_i32 = arith.constant 0 : i32
    %c0_i32_0 = arith.constant 0 : i32
    return %c0_i32 : i32
  }
}

</mosaic_0001>

<bundles_post_ra>
// kernel: tpu_custom_call.1
= control target key start
LH: loop header
LB: loop body
LE: loop exit
PB: predicated region body
PF: predicated region fallthrough
CT: control target
= control target key end

     0   :  { %vm30_vm0 = vcmask 57344   ;;  %v297_v2 = vmov 0   ;;  %s396_s0 = inlined_call_operand.<no memory space> [shape: f32[1], index: 0, kind: input, shape index: {}]   ;;  %s397_s1 = inlined_call_operand.vmem [shape: f32[3,128], index: 1, kind: input, shape index: {}]   ;;  %s398_s2 = inlined_call_operand.vmem [shape: f32[8,1], index: 2, kind: input, shape index: {}]   ;;  %s399_s3 = inlined_call_operand.vmem [shape: f32[1,8], index: 3, kind: input, shape index: {}]   ;;  %s400_s4 = inlined_call_operand.vmem [shape: f32[32,16], index: 4, kind: input, shape index: {}]   ;;  %s401_s5 = inlined_call_operand.vmem [shape: f32[1,32], index: 5, kind: input, shape index: {}]   ;;  %s402_s6 = inlined_call_operand.hbm [shape: f32[1], index: 6, kind: output, shape index: {}]  }
   0x1   :  { %v29_v0 = vld [vmem:[%s399_s3] sm:$0x1]  ;;  %271 = vset.pattern.permute.xlu0 %v297_v2  ;;  %272 = vset.pattern.permute.xlu1 %v297_v2 }
   0x2   :  { %v31_v1 = vsel %vm30_vm0, %v29_v0, -inf }
   0x3   :  { %12 = vsyncpa [#allocation8], 0  ;;  %32 = vmax.xlane.f32.xlu0 %v31_v1  ;;  %v43_v3 = vld [vmem:[%s398_s2] sm:$0xff]  ;;  %vm34_vm1 = vcmask 0   ;;  %v298_v4 = vmov 1.0   ;;  %v299_v5 = vmov 0.0   ;;  %v148_v44 = vlaneseq }
   0x4   :  { %40 = vst.msk [vmem:[#allocation2 + $0x1] sm:$0x1] %vm30_vm0, %v298_v4  ;;  %259 = vmatprep.subr.mxu0 %v299_v5  ;;  %vm300_vm2 = vmmov 0   ;;  %v253_v9 = vld [vmem:[%s397_s1] ss:$0 sm:$0xff]  ;;  %v183_v12 = vld [vmem:[%s400_s4 + $0x18] sm:$0xff] }
   0x5   :  { %41 = vst.msk [vmem:[#allocation4] sm:$0x1] %vm34_vm1, %v299_v5  ;;  %42 = vst.msk [vmem:[#allocation5] sm:$0x1] %vm34_vm1, %v299_v5  ;;  %261 = vmatprep.mubr.msk.f32.mxu0 %vm300_vm2, %v299_v5  ;;  %v187_v13 = vmul.f32 %v183_v12, %v183_v12  ;;  %vm188_vm4 = vcmask 130048   ;;  %vm60_vm5 = vcmask 64512  }
   0x6   :  { %v180_v17 = vld [vmem:[%s400_s4] sm:$0xff]  ;;  %v181_v19 = vld [vmem:[%s400_s4 + $0x8] sm:$0xff]  ;;  %v182_v22 = vld [vmem:[%s400_s4 + $0x10] sm:$0xff]  ;;  %vm158_vm6 = vcmask 1040384   ;;  %vm220_vm7 = vcmask 253952   ;;  %v149_v47 = vshrl.u32 %v148_v44, 7 }
   0x7   :  { %v198_v14 = vsel %vm188_vm4, %v187_v13, 0.0  ;;  %v184_v18 = vmul.f32 %v180_v17, %v180_v17  ;;  %v185_v21 = vmul.f32 %v181_v19, %v181_v19  ;;  %v186_v24 = vmul.f32 %v182_v22, %v182_v22  ;;  %v46_v26 = vld [vmem:[%s397_s1 + $0x2] sm:$0x1]  ;;  %v218_v28 = vld [vmem:[%s401_s5] sm:$0x1]  ;;  %s285_s17 = scalar_lea.hbm %s402_s6, 16 }
   0x8   :  { %v166_v27 = vsel %vm158_vm6, %v46_v26, 0.0  ;;  %v219_v29 = vmul.f32 %v218_v28, %v218_v28  ;;  %v150_v48 = vsub.s32 0, %v149_v47  ;;  %v45_v52 = vld [vmem:[%s397_s1 + $0x1] sm:$0x1]  ;;  %vm153_vm8 = vcmp.gt.f32.partialorder %v46_v26, 0.0  ;;  %p286_p0 = scmp.ne.s32.totalorder %s402_s6, %s285_s17  ;;  %p289_p1 = scmp.lt.u32.totalorder %s285_s17, %s402_s6 }
   0x9   :  { %v189_v20 = vsel %vm188_vm4, %v184_v18, 0.0  ;;  %v192_v23 = vsel %vm188_vm4, %v185_v21, 0.0  ;;  %v195_v25 = vsel %vm188_vm4, %v186_v24, 0.0  ;;  %v234_v21 = vstv %s396_s0 }
   0xa   :  { %v221_v30 = vsel %vm220_vm7, %v219_v29, 0.0  ;;  %p291_p2 = pnand %p289_p1, %p286_p0 }
   0xc   :  { %v165_v43 = vld [vmem:[#allocation5] sm:$0x1] }
  0x19   :  { %53 = vperm.xlu0 %271, %v43_v3  }
  0x38   :  { %199 = vadd.xlane.f32.xlu0 %v198_v14 }
  0x90   :  { %v33_v6 = vpop.xlane.xlu0 %32 }
  0x91   :  { %35 = vst.msk [vmem:[#allocation3] sm:$0x1] %vm34_vm1, %v33_v6  ;;  %v36_v7 = vsub.f32 %v29_v0, %v33_v6 }
  0x93   :  { %v37_v8 = vmul.f32 1.442695, %v36_v7  ;;  %v157_v7 = vld [vmem:[#allocation4] sm:$0x1] }
  0x95   :  { %273 = vpow2.f32 %v37_v8 }
  0x98   :  { %v134_v10 = vld [vmem:[#allocation3] sm:$0x1]  ;;  %v54_v11 = vpop.permute.xlu0 %53 }
  0x99   :  { %145 = vperm.xlu1 %272, %v134_v10   ;;  %vm56_vm3 = vcmp.le.f32.partialorder %v253_v9, %v54_v11 }
  0x9a   :  { %260 = vmatpush3.msk.msra.mxu0 %vm56_vm3, %v298_v4 }
  0x9f   :  { %v274_v15 = vpop.eup %273 }
  0xa0   :  { %39 = vst.msk [vmem:[#allocation2] sm:$0x1] %vm30_vm0, %v274_v15 }
  0xa7   :  { %v59_v16 = vld [vmem:[#allocation2] sm:$0x3] }
  0xa8   :  { %262 = vmatmul.mubr.msk.f32.vlgmr.msra.gmra.mrb[0].mxu0 %vm60_vm5, %v59_v16 }
  0xbd   :  { %190 = vadd.xlane.f32.xlu1 %v189_v20 }
  0xc1   :  { %193 = vadd.xlane.f32.xlu1 %v192_v23 }
  0xc5   :  { %196 = vadd.xlane.f32.xlu1 %v195_v25  ;;  %v200_v58 = vpop.xlane.xlu0 %199 }
  0xc9   :  { %167 = vadd.xlane.f32.xlu1 %v166_v27 }
  0xcd   :  { %222 = vadd.xlane.f32.xlu1 %v221_v30 }
 0x118   :  { %v146_v31 = vpop.permute.xlu1 %145 }
 0x119   :  { %v151_v50 = vrot.slane %v146_v31, %v150_v48 }
 0x14a   :  { %v191_v32 = vpop.xlane.xlu1 %190 }
 0x14e   :  { %v194_v33 = vpop.xlane.xlu1 %193 }
 0x14f   :  { %v201_v34 = vadd.f32 %v194_v33, %v191_v32 }
 0x152   :  { %v197_v35 = vpop.xlane.xlu1 %196 }
 0x153   :  { %v202_v36 = vadd.f32 %v201_v34, %v197_v35 }
 0x155   :  { %v203_v59 = vadd.f32 %v202_v36, %v200_v58 }
 0x156   :  { %v168_v45 = vpop.xlane.xlu1 %167 }
 0x157   :  { %v169_v46 = vadd.f32 %v168_v45, %v165_v43  ;;  %v204_v60 = vrot.slane %v203_v59, 4 }
 0x159   :  { %170 = vst.msk [vmem:[#allocation5] sm:$0x1] %vm34_vm1, %v169_v46  ;;  %v205_v61 = vadd.f32 %v204_v60, %v203_v59 }
 0x15a   :  { %v223_v2 = vpop.xlane.xlu1 %222 }
 0x15b   :  { %v206_v62 = vrot.slane %v205_v61, 2  ;;  %vm227_vm10 = vcmp.eq.f32.partialorder %v223_v2, inf  ;;  %v230_v13 = vand.u32 2147483648, %v223_v2  ;;  %vm229_vm12 = vcmp.eq.f32.partialorder %v223_v2, 0.0 }
 0x15d   :  { %v207_v63 = vadd.f32 %v206_v62, %v205_v61 }
 0x15f   :  { %v208_v0 = vrot.slane %v207_v63, 1 }
 0x160   :  { %v176_v3 = vld [vmem:[#allocation5] sm:$0x1] }
 0x161   :  { %v209_v1 = vadd.f32 %v208_v0, %v207_v63  ;;  %v177_v6 = vadd.f32 1.0, %v176_v3 }
 0x163   :  { %vm212_vm9 = vcmp.eq.f32.partialorder %v209_v1, inf  ;;  %v215_v12 = vand.u32 2147483648, %v209_v1  ;;  %vm214_vm11 = vcmp.eq.f32.partialorder %v209_v1, 0.0 }
 0x17b   :  { %v130_v37 = vpop.f32.mrb[0].mxu0 }
 0x17c   :  { %v135_v38 = vmax.f32 %v130_v37, 1.0  ;;  %v263_v39 = vpop.f32.mrb[1].mxu0 }
 0x17e   :  { %v137_v40 = vrot.slane %v135_v38, 1 }
 0x180   :  { %275 = vrcp.f32 %v137_v40 }
 0x18a   :  { %v276_v41 = vpop.eup %275 }
 0x18b   :  { %v140_v42 = vmul.f32 %v276_v41, %v130_v37 }
 0x18d   :  { %277 = vlog2.f32 %v140_v42 }
 0x18e   :  { %279 = vrsqrt.f32 %v223_v2 }
 0x18f   :  { %281 = vrsqrt.f32 %v209_v1 }
 0x190   :  { %283 = vrcp.f32 %v177_v6 }
 0x197   :  { %v278_v49 = vpop.eup %277 }
 0x198   :  { %v142_v51 = vmul.f32 0.6931472, %v278_v49  ;;  %v280_v4 = vpop.eup %279 }
 0x199   :  { %v282_v5 = vpop.eup %281  ;;  %v226_v9 = vmul.f32 %v280_v4, %v223_v2 }
 0x19a   :  { %v152_v53 = vadd.f32 %v151_v50, %v142_v51  ;;  %v211_v8 = vmul.f32 %v282_v5, %v209_v1  ;;  %v284_v19 = vpop.eup %283 }
 0x19b   :  { %v228_v15 = vsel %vm227_vm10, %v223_v2, %v226_v9 }
 0x19c   :  { %v154_v54 = vsub.f32 %v45_v52, %v152_v53  ;;  %v213_v14 = vsel %vm212_vm9, %v209_v1, %v211_v8  ;;  %v231_v17 = vsel %vm229_vm12, %v230_v13, %v228_v15 }
 0x19d   :  { %v216_v16 = vsel %vm214_vm11, %v215_v12, %v213_v14 }
 0x19e   :  { %v155_v55 = vmul.f32 %v154_v54, %v46_v26  ;;  %v232_v18 = vadd.f32 %v231_v17, %v216_v16 }
 0x1a0   :  { %v156_v56 = vsel %vm153_vm8, %v155_v55, 0.0  ;;  %v235_v24 = vmul.f32 %v234_v21, %v232_v18 }
 0x1a1   :  { %v159_v57 = vsel %vm158_vm6, %v156_v56, 0.0 }
 0x1a2   :  { %160 = vadd.xlane.f32.xlu1 %v159_v57 }
 0x22f   :  { %v161_v10 = vpop.xlane.xlu1 %160 }
 0x230   :  { %v162_v11 = vadd.f32 %v161_v10, %v157_v7 }
 0x232   :  { %164 = vst.msk [vmem:[#allocation4] sm:$0x1] %vm34_vm1, %v162_v11 }
 0x239   :  { %v174_v20 = vld [vmem:[#allocation4] sm:$0x1] }
 0x23a   :  { %v175_v22 = vsub.f32 0.0, %v174_v20 }
 0x23c   :  { %v179_v23 = vmul.f32 %v284_v19, %v175_v22 }
 0x23e   :  { %v236_v25 = vadd.f32 %v235_v24, %v179_v23 }
 0x240   :  { %264 = vpush %v236_v25 }
 0x271   :  { %s265_s14 = spop %264 }
 0x272   :  { %239 = sst [smem:[#allocation7]] %s265_s14 }
 0x273   :  { %294 = shalt.err (!%p291_p2)
}
 0x274   :  { %s301_s0 = smov [#allocation7]  }
 0x275   :  { %247 = dma.smem_to_hbm %s301_s0, 16, %s402_s6, [#allocation8]  }
 0x276   :  { %295 = dma.done.wait [#allocation8], 16  }
 0x277   :  { %296 = vsyncadd [#allocation8], 4294967280 }
 0x278   :  { %251 = sfence }
 0x279   :  { %252 = vsyncpa [#allocation8], 1 }

</bundles_post_ra>
